<compile_context>
chip_gen: v7x
topology: tpu7x:2x2x1
jax: 0.10.0
libtpu: 0.0.40
codegen_flags: <defaults>
</compile_context>

<pallas_src>
import functools

import jax
import jax.numpy as jnp
from jax.experimental import pallas as pl
from jax.experimental.pallas import tpu as pltpu


def _round_up(x, m):
    return ((x + m - 1) // m) * m


# ----------------------------------------------------------------------------
# Generation-aware VMEM budget and tile sizes
# ----------------------------------------------------------------------------

def _detect_vmem_capacity():
    try:
        info = pltpu.get_tpu_info()
        for attr in ("vmem_capacity_bytes", "vmem_bytes", "vmem_size_bytes"):
            v = getattr(info, attr, None)
            if v:
                return int(v)
    except Exception:
        pass
    return 64 * 1024 * 1024          # conservative fallback (v7x-sized)


_VMEM_CAP = _detect_vmem_capacity()
_BIG_VMEM = _VMEM_CAP >= 96 * 1024 * 1024          # v5e / v6e (128 MiB parts)
_VMEM_LIMIT = min((_VMEM_CAP * 3) // 4, 100 * 1024 * 1024)
_TM_MM = 512 if _BIG_VMEM else 256                  # matmul M tile
_TR_RED = 2048 if _BIG_VMEM else 1024               # reduction row tile
_TP_LPIPS = 1024 if _BIG_VMEM else 512              # LPIPS spatial tile


# ----------------------------------------------------------------------------
# Tiled matmul with resident weights + fused bias/activation epilogue
# ----------------------------------------------------------------------------

def _mm_bias_act_kernel(a_ref, b_ref, bias_ref, o_ref, *, act):
    acc = jnp.dot(a_ref[...], b_ref[...], preferred_element_type=jnp.float32)
    acc = acc + bias_ref[...]
    if act == "relu":
        acc = jnp.maximum(acc, 0.0)
    elif act == "lrelu":
        acc = jnp.where(acc > 0.0, acc, 0.2 * acc)
    o_ref[...] = acc.astype(o_ref.dtype)


def matmul_bias_act(a, b, bias=None, act="none", tm=None, out_dtype=jnp.float32):
    """out = act(a @ b + bias).  bf16 MXU operands, f32 accumulation.

    Single M grid axis; the full (K, N) weight uses a constant index_map so it
    is DMA'd into VMEM once and stays resident across all M tiles."""
    tm = _TM_MM if tm is None else tm
    M, K = a.shape
    K2, N = b.shape
    assert K == K2
    Np = _round_up(N, 128)
    tm_eff = min(tm, _round_up(M, 8))
    Mp = _round_up(M, tm_eff)

    a_p = a.astype(jnp.bfloat16)
    if Mp != M:
        a_p = jnp.pad(a_p, ((0, Mp - M), (0, 0)))
    b_p = b.astype(jnp.bfloat16)
    if Np != N:
        b_p = jnp.pad(b_p, ((0, 0), (0, Np - N)))
    if bias is None:
        bias_p = jnp.zeros((1, Np), jnp.float32)
    else:
        bias_p = bias.astype(jnp.float32).reshape(1, N)
        if Np != N:
            bias_p = jnp.pad(bias_p, ((0, 0), (0, Np - N)))

    out = pl.pallas_call(
        functools.partial(_mm_bias_act_kernel, act=act),
        out_shape=jax.ShapeDtypeStruct((Mp, Np), out_dtype),
        grid=(Mp // tm_eff,),
        in_specs=[
            pl.BlockSpec((tm_eff, K), lambda i: (i, 0)),
            pl.BlockSpec((K, Np), lambda i: (0, 0)),        # resident weights
            pl.BlockSpec((1, Np), lambda i: (0, 0)),
        ],
        out_specs=pl.BlockSpec((tm_eff, Np), lambda i: (i, 0)),
        compiler_params=pltpu.CompilerParams(
            dimension_semantics=("parallel",),
            vmem_limit_bytes=_VMEM_LIMIT),
    )(a_p, b_p, bias_p)
    return out[:M, :N]


# ----------------------------------------------------------------------------
# Fused 3x3 / stride-1 / pad-1 conv + bias + ReLU (VGG layers)
# ----------------------------------------------------------------------------

def _conv3x3_kernel(x_ref, h_ref, w_ref, b_ref, o_ref, *, R, W, taps_per_dot):
    Cin = x_ref.shape[-1]
    Cout = o_ref.shape[-1]
    num_dots = 9 // taps_per_dot
    # (R+2, W+2, Cin) padded-input window: R main rows + 2 halo rows.
    win = jnp.concatenate([x_ref[...], h_ref[...]], axis=0)
    acc = jnp.zeros((R * W, Cout), jnp.float32)
    for d in range(num_dots):
        pieces = []
        for t in range(d * taps_per_dot, (d + 1) * taps_per_dot):
            i, j = t // 3, t % 3
            pieces.append(win[i:i + R, j:j + W, :])
        # Pack taps along K: one (R*W, taps_per_dot*Cin) LHS per deep dot.
        lhs = jnp.concatenate(pieces, axis=-1).reshape(R * W, taps_per_dot * Cin)
        acc = acc + jnp.dot(lhs, w_ref[d], preferred_element_type=jnp.float32)
    y = jnp.maximum(acc + b_ref[...], 0.0)                   # fused bias + ReLU
    o_ref[...] = y.reshape(R, W, Cout).astype(o_ref.dtype)


def conv3x3_relu(x, w, b, out_dtype=jnp.bfloat16):
    """x: (N,H,W,Cin) NHWC; w: (Cout,Cin,3,3) torch layout; b: (Cout,).

    Grid over (batch, output-row block of R rows).  The overlapping (R+2)-row
    window is provided as a non-overlapping R-row block of the padded input
    plus a tiny 2-row halo array (gathered once host-side, ~2/R extra bytes),
    so everything uses standard auto-pipelined BlockSpecs.  Weights are packed
    as (num_dots, taps_per_dot*Cin, Cout) and fetched once (constant
    index_map)."""
    N, H, W, Cin = x.shape
    Cout = w.shape[0]

    if H <= 8:
        R = H                            # whole map for the deep 4x4/2x2 layers
    elif H % 8 == 0:
        R = 8
    elif H % 4 == 0:
        R = 4
    elif H % 2 == 0:
        R = 2
    else:
        R = 1
    nrb = H // R
    Wp = W + 2

    xp = jnp.pad(x.astype(jnp.bfloat16), ((0, 0), (1, 1), (1, 1), (0, 0)))
    # Bottom 2-row halo of every R-row block: padded rows [rb*R+R, rb*R+R+2).
    row_idx = jnp.arange(nrb)[:, None] * R + R + jnp.arange(2)[None, :]
    halo = jnp.take(xp, row_idx, axis=1).reshape(N * nrb, 2, Wp, Cin)

    # Fewer, deeper MXU dots: 3 dots of K=3*Cin (1 dot of K=9*Cin for the stem).
    taps_per_dot = 9 if 9 * Cin <= 256 else 3
    num_dots = 9 // taps_per_dot
    wt = jnp.transpose(w, (2, 3, 1, 0)).reshape(
        num_dots, taps_per_dot * Cin, Cout).astype(jnp.bfloat16)
    bias = b.astype(jnp.float32).reshape(1, Cout)

    return pl.pallas_call(
        functools.partial(_conv3x3_kernel, R=R, W=W, taps_per_dot=taps_per_dot),
        out_shape=jax.ShapeDtypeStruct((N, H, W, Cout), out_dtype),
        grid=(N, nrb),
        in_specs=[
            pl.BlockSpec((None, R, Wp, Cin), lambda n, rb: (n, rb, 0, 0)),
            pl.BlockSpec((None, 2, Wp, Cin),
                         lambda n, rb: (n * nrb + rb, 0, 0, 0)),
            pl.BlockSpec((num_dots, taps_per_dot * Cin, Cout),
                         lambda n, rb: (0, 0, 0)),            # resident weights
            pl.BlockSpec((1, Cout), lambda n, rb: (0, 0)),
        ],
        out_specs=pl.BlockSpec((None, R, W, Cout), lambda n, rb: (n, rb, 0, 0)),
        compiler_params=pltpu.CompilerParams(
            dimension_semantics=("parallel", "parallel"),
            vmem_limit_bytes=_VMEM_LIMIT),
    )(xp, halo, wt, bias)


# ----------------------------------------------------------------------------
# L1 reconstruction loss (tiled reduction)
# ----------------------------------------------------------------------------

def _l1_kernel(x_ref, y_ref, o_ref):
    i = pl.program_id(0)

    @pl.when(i == 0)
    def _():
        o_ref[...] = jnp.zeros_like(o_ref)

    s = jnp.sum(jnp.abs(x_ref[...] - y_ref[...]))
    o_ref[...] += jnp.reshape(s, (1, 1))


def l1_mean(x, y, tr=None):
    """mean(|x - y|) over all elements; row-block grid + scalar accumulator.
    Padding copies are only made when the element count is not 128-aligned."""
    # TODO(synk): split across v7x's two TensorCores (leading parallel axis
    # with two partial accumulators); negligible at these shapes.
    tr = _TR_RED if tr is None else tr
    n = x.size
    xf = x.reshape(-1).astype(jnp.float32)
    yf = y.reshape(-1).astype(jnp.float32)
    pad = (-n) % 128
    if pad:
        xf = jnp.pad(xf, (0, pad))
        yf = jnp.pad(yf, (0, pad))
    xf = xf.reshape(-1, 128)
    yf = yf.reshape(-1, 128)
    R = xf.shape[0]
    tr_eff = min(tr, _round_up(R, 8))
    Rp = _round_up(R, tr_eff)
    if Rp != R:
        xf = jnp.pad(xf, ((0, Rp - R), (0, 0)))
        yf = jnp.pad(yf, ((0, Rp - R), (0, 0)))
    s = pl.pallas_call(
        _l1_kernel,
        out_shape=jax.ShapeDtypeStruct((1, 1), jnp.float32),
        grid=(Rp // tr_eff,),
        in_specs=[pl.BlockSpec((tr_eff, 128), lambda i: (i, 0)),
                  pl.BlockSpec((tr_eff, 128), lambda i: (i, 0))],
        out_specs=pl.BlockSpec((1, 1), lambda i: (0, 0)),
        compiler_params=pltpu.CompilerParams(
            dimension_semantics=("arbitrary",),
            vmem_limit_bytes=_VMEM_LIMIT),
    )(xf, yf)
    return s[0, 0] / n


# ----------------------------------------------------------------------------
# LPIPS per-layer score: normalize + sq-diff, lane-dense (n, C) accumulation
# ----------------------------------------------------------------------------

def _lpips_layer_kernel(f0_ref, f1_ref, o_ref):
    p = pl.program_id(0)

    @pl.when(p == 0)
    def _():
        o_ref[...] = jnp.zeros_like(o_ref)

    f0 = f0_ref[...].astype(jnp.float32)                     # (n, tp, C)
    f1 = f1_ref[...].astype(jnp.float32)
    # normalize_tensor: x / (sqrt(sum(x^2, ch)) + 1e-10); reciprocal -> EUP slot
    inv0 = pl.reciprocal(jnp.sqrt(jnp.sum(f0 * f0, axis=2, keepdims=True))
                         + 1e-10, approx=True)
    inv1 = pl.reciprocal(jnp.sqrt(jnp.sum(f1 * f1, axis=2, keepdims=True))
                         + 1e-10, approx=True)
    d = (f0 * inv0 - f1 * inv1) ** 2
    # Lane-dense (n, C) partial; channel weighting / final lane reduce happen
    # once outside the kernel.
    o_ref[...] += jnp.sum(d, axis=1)


def lpips_layer_score_pair(feats, w, n, tp=None):
    """feats: (2n, H, W, C) from one batched VGG pass, rows [0:n] = input
    features, [n:2n] = reconstruction features.  Returns (n, 1)."""
    tp = _TP_LPIPS if tp is None else tp
    twoN, H, W, C = feats.shape
    assert twoN == 2 * n
    P = H * W
    fm = feats.reshape(twoN, P, C)
    tp_eff = min(tp, _round_up(P, 8))
    Pp = _round_up(P, tp_eff)
    if Pp != P:
        fm = jnp.pad(fm, ((0, 0), (0, Pp - P), (0, 0)))      # zero rows -> 0 score
    acc = pl.pallas_call(
        _lpips_layer_kernel,
        out_shape=jax.ShapeDtypeStruct((n, C), jnp.float32),
        grid=(Pp // tp_eff,),
        in_specs=[
            pl.BlockSpec((n, tp_eff, C), lambda p: (0, p, 0)),   # x features
            pl.BlockSpec((n, tp_eff, C), lambda p: (1, p, 0)),   # recon features
        ],
        out_specs=pl.BlockSpec((n, C), lambda p: (0, 0)),
        compiler_params=pltpu.CompilerParams(
            dimension_semantics=("arbitrary",),
            vmem_limit_bytes=_VMEM_LIMIT),
    )(fm, fm)
    w32 = w.astype(jnp.float32)[None, :]
    return jnp.sum(acc * w32, axis=-1, keepdims=True) * (1.0 / P)


# ----------------------------------------------------------------------------
# BatchNorm2d (training-mode batch stats) + LeakyReLU, two tiled passes (bf16)
# ----------------------------------------------------------------------------

def _bn_stats_kernel(x_ref, o_ref):
    i = pl.program_id(0)

    @pl.when(i == 0)
    def _():
        o_ref[...] = jnp.zeros_like(o_ref)

    x = x_ref[...].astype(jnp.float32)
    s1 = jnp.sum(x, axis=0, keepdims=True)
    s2 = jnp.sum(x * x, axis=0, keepdims=True)
    o_ref[...] += jnp.concatenate([s1, s2], axis=0)


def _bn_apply_kernel(x_ref, stats_ref, g_ref, b_ref, o_ref, *, inv_m, eps, slope):
    x = x_ref[...].astype(jnp.float32)
    mean = stats_ref[0:1, :] * inv_m
    var = stats_ref[1:2, :] * inv_m - mean * mean            # biased batch var
    scale = g_ref[...] * jax.lax.rsqrt(var + eps)
    y = (x - mean) * scale + b_ref[...]
    o_ref[...] = jnp.where(y > 0.0, y, slope * y).astype(o_ref.dtype)  # LeakyReLU


def batchnorm_lrelu(x2d, gamma, beta, slope=0.2, eps=1e-5, tm=None,
                    out_dtype=jnp.bfloat16):
    """One-pass sum/sumsq stats (f32 accumulation over bf16 activations)
    + parallel normalize pass with fused LeakyReLU, bf16 in / bf16 out."""
    # TODO(synk): fuse the stats pass into the preceding conv's matmul epilogue
    # and the apply pass into the next conv's load path.
    tm = _TR_RED if tm is None else tm
    M, C = x2d.shape
    tm_eff = min(tm, _round_up(M, 8))
    Mp = _round_up(M, tm_eff)
    xp = jnp.pad(x2d, ((0, Mp - M), (0, 0))) if Mp != M else x2d
    g = gamma.astype(jnp.float32).reshape(1, C)
    b = beta.astype(jnp.float32).reshape(1, C)
    grid = (Mp // tm_eff,)

    stats = pl.pallas_call(
        _bn_stats_kernel,
        out_shape=jax.ShapeDtypeStruct((2, C), jnp.float32),
        grid=grid,
        in_specs=[pl.BlockSpec((tm_eff, C), lambda i: (i, 0))],
        out_specs=pl.BlockSpec((2, C), lambda i: (0, 0)),
        compiler_params=pltpu.CompilerParams(
            dimension_semantics=("arbitrary",),
            vmem_limit_bytes=_VMEM_LIMIT),
    )(xp)

    out = pl.pallas_call(
        functools.partial(_bn_apply_kernel, inv_m=1.0 / M, eps=eps, slope=slope),
        out_shape=jax.ShapeDtypeStruct((Mp, C), out_dtype),
        grid=grid,
        in_specs=[
            pl.BlockSpec((tm_eff, C), lambda i: (i, 0)),
            pl.BlockSpec((2, C), lambda i: (0, 0)),
            pl.BlockSpec((1, C), lambda i: (0, 0)),
            pl.BlockSpec((1, C), lambda i: (0, 0)),
        ],
        out_specs=pl.BlockSpec((tm_eff, C), lambda i: (i, 0)),
        compiler_params=pltpu.CompilerParams(
            dimension_semantics=("parallel",),
            vmem_limit_bytes=_VMEM_LIMIT),
    )(xp, stats, g, b)
    return out[:M]


# ----------------------------------------------------------------------------
# Discriminator 4x4 conv: bf16 im2col + resident-weight Pallas matmul
# ----------------------------------------------------------------------------

def conv2d_im2col(x, w, b, stride, pad, act="none", out_dtype=jnp.float32):
    # TODO(synk): fuse the 4x4/stride-2 taps like the 3x3 VGG path (needs
    # strided column windows in-kernel); the discriminator is a small fraction
    # of total cost at these resolutions.
    N, H, W, Cin = x.shape
    Cout, _, kh, kw = w.shape
    xp = jnp.pad(x.astype(jnp.bfloat16), ((0, 0), (pad, pad), (pad, pad), (0, 0)))
    Hp, Wp = H + 2 * pad, W + 2 * pad
    Ho = (Hp - kh) // stride + 1
    Wo = (Wp - kw) // stride + 1
    patches = []
    for i in range(kh):
        for j in range(kw):
            patches.append(
                xp[:, i:i + stride * Ho:stride, j:j + stride * Wo:stride, :])
    cols = jnp.concatenate(patches, axis=-1).reshape(N * Ho * Wo, kh * kw * Cin)
    wmat = jnp.transpose(w, (2, 3, 1, 0)).reshape(kh * kw * Cin, Cout)
    out = matmul_bias_act(cols, wmat, b, act=act, out_dtype=out_dtype)
    return out.reshape(N, Ho, Wo, Cout)


def maxpool2(x):
    N, H, W, C = x.shape
    return x.reshape(N, H // 2, 2, W // 2, 2, C).max(axis=(2, 4))


# ----------------------------------------------------------------------------
# Networks: VGG16 feature extractor (LPIPS) + NLayerDiscriminator
# ----------------------------------------------------------------------------

VGG_CFG = [(3, 64), (64, 64), "M", (64, 128), (128, 128), "M",
           (128, 256), (256, 256), (256, 256), "M",
           (256, 512), (512, 512), (512, 512), "M",
           (512, 512), (512, 512), (512, 512)]
# feature taps: relu1_2, relu2_2, relu3_3, relu4_3, relu5_3 (0-based conv index)
VGG_TAPS = {1, 3, 6, 9, 12}
LPIPS_CHNS = [64, 128, 256, 512, 512]


def init_params(seed=0):
    keys = iter(jax.random.split(jax.random.PRNGKey(seed), 64))
    params = {}
    vgg = []
    for item in VGG_CFG:
        if item == "M":
            continue
        cin, cout = item
        std = (2.0 / (cin * 9)) ** 0.5
        w = std * jax.random.normal(next(keys), (cout, cin, 3, 3), jnp.float32)
        vgg.append((w, jnp.zeros((cout,), jnp.float32)))
    params["vgg"] = vgg
    params["lins"] = [jnp.abs(0.1 * jax.random.normal(next(keys), (c,), jnp.float32))
                      for c in LPIPS_CHNS]
    # discriminator: weights_init -> Conv W ~ N(0, 0.02); BN gamma ~ N(1, 0.02)
    disc_cfg = [(3, 64, 2, True), (64, 128, 2, False), (128, 256, 2, False),
                (256, 512, 1, False), (512, 1, 1, True)]
    disc = []
    for cin, cout, stride, has_bias in disc_cfg:
        w = 0.02 * jax.random.normal(next(keys), (cout, cin, 4, 4), jnp.float32)
        b = jnp.zeros((cout,), jnp.float32) if has_bias else None
        disc.append({"w": w, "b": b, "stride": stride})
    params["disc_convs"] = disc
    params["disc_bns"] = [
        (1.0 + 0.02 * jax.random.normal(next(keys), (c,), jnp.float32),
         jnp.zeros((c,), jnp.float32))
        for c in (128, 256, 512)]
    params["scaling_shift"] = jnp.array([-0.030, -0.088, -0.188], jnp.float32)
    params["scaling_scale"] = jnp.array([0.458, 0.448, 0.450], jnp.float32)
    return params


def vgg_features(params, x_nhwc):
    feats, h, ci = [], x_nhwc, 0
    for item in VGG_CFG:
        if item == "M":
            h = maxpool2(h)
            continue
        w, b = params["vgg"][ci]
        h = conv3x3_relu(h, w, b)
        if ci in VGG_TAPS:
            feats.append(h)
        ci += 1
    return feats


def lpips(params, x_nhwc, y_nhwc):
    shift = params["scaling_shift"].reshape(1, 1, 1, 3)
    scale = params["scaling_scale"].reshape(1, 1, 1, 3)
    n = x_nhwc.shape[0]
    # Single batched VGG pass over [x; x_rec] (halves conv launches / streams).
    both = jnp.concatenate([x_nhwc, y_nhwc], axis=0)
    both = ((both - shift) / scale).astype(jnp.bfloat16)
    feats = vgg_features(params, both)
    val = jnp.zeros((n, 1), jnp.float32)
    for k in range(len(LPIPS_CHNS)):
        val = val + lpips_layer_score_pair(feats[k], params["lins"][k], n)
    return val.reshape(n, 1, 1, 1)          # matches torch LPIPS output (N,1,1,1)


def discriminator(params, x_nhwc):
    # NOTE: called once per input (not batched across real/fake) so that the
    # training-mode BatchNorm batch statistics match the reference's two
    # independent discriminator forward passes.  Intermediate activations are
    # kept bf16 to halve HBM traffic; logits come out in f32.
    convs, bns = params["disc_convs"], params["disc_bns"]
    h = conv2d_im2col(x_nhwc, convs[0]["w"], convs[0]["b"], stride=2, pad=1,
                      act="lrelu", out_dtype=jnp.bfloat16)
    for li in range(1, 4):
        h = conv2d_im2col(h, convs[li]["w"], None, stride=convs[li]["stride"],
                          pad=1, act="none", out_dtype=jnp.bfloat16)
        Nb, Ho, Wo, C = h.shape
        gamma, beta = bns[li - 1]
        h = batchnorm_lrelu(h.reshape(Nb * Ho * Wo, C), gamma, beta,
                            out_dtype=jnp.bfloat16)
        h = h.reshape(Nb, Ho, Wo, C)
    h = conv2d_im2col(h, convs[4]["w"], convs[4]["b"], stride=1, pad=1,
                      act="none", out_dtype=jnp.float32)
    return h                                               # (N, Ho, Wo, 1) logits


# ----------------------------------------------------------------------------
# Loss helpers (match torch reference)
# ----------------------------------------------------------------------------

def adopt_weight(weight, global_step, threshold=0, value=0.0):
    # global_step / threshold are static Python values (as in the reference).
    if global_step < threshold:
        weight = value
    return weight


def hinge_d_loss(logits_real, logits_fake):
    loss_real = jnp.mean(jnp.maximum(0.0, 1.0 - logits_real))
    loss_fake = jnp.mean(jnp.maximum(0.0, 1.0 + logits_fake))
    return 0.5 * (loss_real + loss_fake)


def measure_perplexity(predicted_indices, n_embed):
    enc = jax.nn.one_hot(predicted_indices.reshape(-1), n_embed, dtype=jnp.float32)
    avg_probs = enc.mean(0)
    perplexity = jnp.exp(-jnp.sum(avg_probs * jnp.log(avg_probs + 1e-10)))
    cluster_use = jnp.sum(avg_probs > 0)
    return perplexity, cluster_use


# ----------------------------------------------------------------------------
# VQLPIPSWithDiscriminator.forward
# ----------------------------------------------------------------------------

def vqlpips_forward(params, codebook_loss, inputs, reconstructions,
                    optimizer_idx, global_step, cond=None, split="train",
                    predicted_indices=None, *, codebook_weight=1.0,
                    pixelloss_weight=1.0, perceptual_weight=1.0,
                    disc_factor=1.0, disc_weight=1.0, disc_start=0,
                    n_classes=None):
    # inputs / reconstructions: NCHW float32 (PyTorch convention).
    if codebook_loss is None:
        codebook_loss = jnp.array([0.0], jnp.float32)
    x = jnp.transpose(inputs, (0, 2, 3, 1)).astype(jnp.float32)
    xr = jnp.transpose(reconstructions, (0, 2, 3, 1)).astype(jnp.float32)

    # rec_loss = |x - xr| ; rec_loss += w_p * p_loss ; nll = mean(rec_loss)
    rec_l1 = l1_mean(x, xr)
    p_loss = lpips(params, x, xr)                           # (N,1,1,1)
    nll_loss = rec_l1 + perceptual_weight * jnp.mean(p_loss)
    rec_loss_mean = nll_loss                                # mean of broadcast map

    if optimizer_idx == 0:
        assert cond is None
        logits_fake = discriminator(params, xr)
        g_loss = -jnp.mean(logits_fake)
        # TODO(synk): calculate_adaptive_weight needs torch.autograd.grad w.r.t.
        # the external generator's last decoder layer (not part of this module);
        # we take the eval-mode RuntimeError fallback: d_weight = 0.
        d_weight = jnp.array(0.0, jnp.float32)
        df = adopt_weight(disc_factor, global_step, threshold=disc_start)
        loss = (nll_loss + d_weight * df * g_loss
                + codebook_weight * jnp.mean(codebook_loss))
        log = {
            f"{split}/total_loss": loss,
            f"{split}/quant_loss": jnp.mean(codebook_loss),
            f"{split}/nll_loss": nll_loss,
            f"{split}/rec_loss": rec_loss_mean,
            f"{split}/p_loss": jnp.mean(p_loss),
            f"{split}/d_weight": d_weight,
            f"{split}/disc_factor": jnp.array(df, jnp.float32),
            f"{split}/g_loss": g_loss,
        }
        if predicted_indices is not None:
            assert n_classes is not None
            perplexity, cluster_usage = measure_perplexity(predicted_indices,
                                                           n_classes)
            log[f"{split}/perplexity"] = perplexity
            log[f"{split}/cluster_usage"] = cluster_usage
        return loss, log

    if optimizer_idx == 1:
        assert cond is None
        logits_real = discriminator(params, x)
        logits_fake = discriminator(params, xr)
        df = adopt_weight(disc_factor, global_step, threshold=disc_start)
        d_loss = df * hinge_d_loss(logits_real, logits_fake)
        log = {
            f"{split}/disc_loss": d_loss,
            f"{split}/logits_real": jnp.mean(logits_real),
            f"{split}/logits_fake": jnp.mean(logits_fake),
        }
        return d_loss, log


# ----------------------------------------------------------------------------
# Demo
# ----------------------------------------------------------------------------

if __name__ == "__main__":
    key = jax.random.PRNGKey(0)
    k1, k2, k3, k4 = jax.random.split(key, 4)
    N, C, H, W = 2, 3, 32, 32                  # >=32 so PatchGAN output is valid
    inputs = jax.random.uniform(k1, (N, C, H, W), jnp.float32, -1.0, 1.0)
    reconstructions = jax.random.uniform(k2, (N, C, H, W), jnp.float32, -1.0, 1.0)
    codebook_loss = 0.1 * jnp.abs(jax.random.normal(k3, (1,), jnp.float32))
    predicted_indices = jax.random.randint(k4, (N, 8, 8), 0, 16)

    params = init_params(seed=0)

    loss0, log0 = vqlpips_forward(
        params, codebook_loss, inputs, reconstructions,
        optimizer_idx=0, global_step=10, predicted_indices=predicted_indices,
        disc_start=1, n_classes=16)
    loss1, log1 = vqlpips_forward(
        params, codebook_loss, inputs, reconstructions,
        optimizer_idx=1, global_step=10, disc_start=1)

    jax.block_until_ready((loss0, loss1))
    for v in list(log0.values()) + list(log1.values()):
        jax.block_until_ready(v)
    assert bool(jnp.isfinite(loss0)) and bool(jnp.isfinite(loss1))
    print("KERNEL_OK")
</pallas_src>

<mosaic_0001>
module attributes {stable_mosaic.version = 11 : i64} {
  func.func @_l1_kernel(%arg0: i32, %arg1: memref<48x128xf32, #tpu.memory_space<vmem>>, %arg2: memref<48x128xf32, #tpu.memory_space<vmem>>, %arg3: memref<1x1xf32, #tpu.memory_space<vmem>>) attributes {dimension_semantics = [#tpu.dimension_semantics<arbitrary>], iteration_bounds = array<i64: 1>, scalar_prefetch = 0 : i64, scratch_operands = 0 : i64, tpu.core_type = #tpu.core_type<tc>, window_params = [{transform_indices = @transform_0, window_bounds = array<i64: 48, 128>}, {transform_indices = @transform_1, window_bounds = array<i64: 48, 128>}, {pipeline_mode = #tpu.pipeline_mode<synchronous>, transform_indices = @transform_2, window_bounds = array<i64: 1, 1>}]} {
    %c0_i32 = arith.constant 0 : i32
    %0 = arith.cmpi eq, %arg0, %c0_i32 : i32
    %1 = arith.extui %0 : i1 to i32
    %c0_i32_0 = arith.constant 0 : i32
    %2 = arith.cmpi ne, %1, %c0_i32_0 : i32
    scf.if %2 {
      %cst_8 = arith.constant 0.000000e+00 : f32
      %15 = vector.broadcast %cst_8 : f32 to vector<1x1xf32>
      %c0_9 = arith.constant 0 : index
      %c0_10 = arith.constant 0 : index
      %16 = vector.load %arg3[%c0_9, %c0_10] : memref<1x1xf32, #tpu.memory_space<vmem>>, vector<1x1xf32>
      tpu.vector_store %arg3[%c0_9, %c0_10], %15 {strides = array<i32>} : memref<1x1xf32, #tpu.memory_space<vmem>>, vector<1x1xf32>,
    } else {
    }
    %c0 = arith.constant 0 : index
    %c0_1 = arith.constant 0 : index
    %3 = vector.load %arg1[%c0, %c0_1] : memref<48x128xf32, #tpu.memory_space<vmem>>, vector<48x128xf32>
    %c0_2 = arith.constant 0 : index
    %c0_3 = arith.constant 0 : index
    %4 = vector.load %arg2[%c0_2, %c0_3] : memref<48x128xf32, #tpu.memory_space<vmem>>, vector<48x128xf32>
    %5 = arith.subf %3, %4 : vector<48x128xf32>
    %6 = math.absf %5 : vector<48x128xf32>
    %7 = vector.shape_cast %6 : vector<48x128xf32> to vector<1x48x128xf32>
    %cst = arith.constant dense<0.000000e+00> : vector<1xf32>
    %8 = vector.multi_reduction <add>, %7, %cst [1, 2] : vector<1x48x128xf32> to vector<1xf32>
    %9 = vector.shape_cast %8 : vector<1xf32> to vector<1x1x1xf32>
    %10 = vector.extract %9[0, 0, 0] : f32 from vector<1x1x1xf32>
    %c0_4 = arith.constant 0 : index
    %c0_5 = arith.constant 0 : index
    %11 = vector.load %arg3[%c0_4, %c0_5] : memref<1x1xf32, #tpu.memory_space<vmem>>, vector<1x1xf32>
    %12 = vector.broadcast %10 : f32 to vector<1x1xf32>
    %13 = arith.addf %11, %12 : vector<1x1xf32>
    %c0_6 = arith.constant 0 : index
    %c0_7 = arith.constant 0 : index
    %14 = vector.load %arg3[%c0_6, %c0_7] : memref<1x1xf32, #tpu.memory_space<vmem>>, vector<1x1xf32>
    tpu.vector_store %arg3[%c0_6, %c0_7], %13 {strides = array<i32>} : memref<1x1xf32, #tpu.memory_space<vmem>>, vector<1x1xf32>,
    return
  }
  func.func @transform_0(%arg0: i32) -> (i32, i32) {
    %c0_i32 = arith.constant 0 : i32
    %c0_i32_0 = arith.constant 0 : i32
    return %arg0, %c0_i32 : i32, i32
  }
  func.func @transform_1(%arg0: i32) -> (i32, i32) {
    %c0_i32 = arith.constant 0 : i32
    %c0_i32_0 = arith.constant 0 : i32
    return %arg0, %c0_i32 : i32, i32
  }
  func.func @transform_2(%arg0: i32) -> (i32, i32) {
    %c0_i32 = arith.constant 0 : i32
    %c0_i32_0 = arith.constant 0 : i32
    %c0_i32_1 = arith.constant 0 : i32
    return %c0_i32, %c0_i32_0 : i32, i32
  }
}

</mosaic_0001>

<bundles_post_ra>
// kernel: tpu_custom_call.1
= control target key start
LH: loop header
LB: loop body
LE: loop exit
PB: predicated region body
PF: predicated region fallthrough
CT: control target
= control target key end

     0   :  { %7 = vsyncpa [#allocation3], 0  ;;  %s244_s0 = inlined_call_operand.hbm [shape: f32[48,128], index: 0, kind: input, shape index: {}]   ;;  %s245_s1 = inlined_call_operand.hbm [shape: f32[48,128], index: 1, kind: input, shape index: {}]   ;;  %s246_s2 = inlined_call_operand.hbm [shape: f32[1,1], index: 2, kind: output, shape index: {}]  }
   0x1   :  { %8 = vsyncpa [#allocation6], 0 }
   0x2   :  { %9 = vsyncpa [#allocation4], 0  ;;  %s185_s9 = smov [#allocation2]   ;;  %s113_s13 = scalar_lea.hbm %s244_s0, 768 }
   0x3   :  { %s15_s10 = sshll.u32 %s185_s9, 4  ;;  %p114_p0 = scmp.ne.s32.totalorder %s244_s0, %s113_s13  ;;  %s16_s10 = int_to_ptr.vmem [resolvable:$true] %s15_s10 }
   0x4   :  { %p117_p1 = scmp.lt.u32.totalorder %s113_s13, %s244_s0 }
   0x6   :  { %p119_p2 = pnand %p117_p1, %p114_p0 }
   0x8   :  { %122 = shalt.err (!%p119_p2)
}
   0x9   :  { %s123_s18 = scalar_lea.vmem %s16_s10, 768  ;;  %p128_p4 = scmp.lt.s32.totalorder %s16_s10, %s16_s10 }
   0xa   :  { %p124_p3 = scmp.ne.s32.totalorder %s16_s10, %s123_s18  ;;  %p129_p5 = scmp.lt.s32.totalorder %s123_s18, %s123_s18 }
   0xc   :  { %p130_p6 = por %p129_p5, %p128_p4 }
   0xe   :  { %p131_p7 = pnand %p130_p6, %p124_p3 }
  0x10   :  { %134 = shalt.err (!%p131_p7)
}
  0x11   :  { %s186_s19 = smov 128   ;;  %s187_s20 = smov 8  }
  0x12   :  { %21 = dma.hbm_to_vmem [thread:$0]  %s244_s0, 768, %s16_s10, [#allocation3], %s186_s19, %s186_s19, %s187_s20  }
  0x13   :  { %s188_s23 = smov [#allocation5]   ;;  %s135_s27 = scalar_lea.hbm %s245_s1, 768 }
  0x14   :  { %s27_s24 = sshll.u32 %s188_s23, 4  ;;  %p136_p8 = scmp.ne.s32.totalorder %s245_s1, %s135_s27  ;;  %s28_s24 = int_to_ptr.vmem [resolvable:$true] %s27_s24 }
  0x15   :  { %p139_p9 = scmp.lt.u32.totalorder %s135_s27, %s245_s1 }
  0x17   :  { %p141_p10 = pnand %p139_p9, %p136_p8 }
  0x19   :  { %144 = shalt.err (!%p141_p10)
}
  0x1a   :  { %s145_s4 = scalar_lea.vmem %s28_s24, 768  ;;  %p150_p12 = scmp.lt.s32.totalorder %s28_s24, %s28_s24 }
  0x1b   :  { %p146_p11 = scmp.ne.s32.totalorder %s28_s24, %s145_s4  ;;  %p151_p13 = scmp.lt.s32.totalorder %s145_s4, %s145_s4 }
  0x1d   :  { %p152_p0 = por %p151_p13, %p150_p12 }
  0x1f   :  { %p153_p1 = pnand %p152_p0, %p146_p11 }
  0x21   :  { %156 = shalt.err (!%p153_p1)
}
  0x22   :  { %33 = dma.hbm_to_vmem [thread:$0]  %s245_s1, 768, %s28_s24, [#allocation6], %s186_s19, %s186_s19, %s187_s20  }
  0x23   :  { %179 = dma.done.wait [#allocation3], 768  }
  0x24   :  { %180 = vsyncadd [#allocation3], 4294966528 }
  0x25   :  { %181 = dma.done.wait [#allocation6], 768  }
  0x26   :  { %182 = vsyncadd [#allocation6], 4294966528  ;;  %v46_v0 = vld [vmem:[#allocation2] sm:$0xff]  ;;  %v47_v1 = vld [vmem:[#allocation2 + $0x8] sm:$0xff]  ;;  %vm44_vm0 = vcmask 0   ;;  %v189_v29 = vmov 0.0  }
  0x27   :  { %v48_v2 = vld [vmem:[#allocation2 + $0x10] sm:$0xff]  ;;  %v49_v3 = vld [vmem:[#allocation2 + $0x18] sm:$0xff]  ;;  %v50_v4 = vld [vmem:[#allocation2 + $0x20] sm:$0xff]  ;;  %45 = vst.msk [vmem:[#allocation7] sm:$0x1] %vm44_vm0, %v189_v29  ;;  %s190_s1 = smov [#allocation7]  }
  0x28   :  { %v52_v5 = vld [vmem:[#allocation5] sm:$0xff]  ;;  %v53_v6 = vld [vmem:[#allocation5 + $0x8] sm:$0xff]  ;;  %v54_v7 = vld [vmem:[#allocation5 + $0x10] sm:$0xff]  ;;  %s95_s6 = sshll.u32 %s190_s1, 4  ;;  %s96_s6 = int_to_ptr.vmem [resolvable:$true] %s95_s6 }
  0x29   :  { %v55_v8 = vld [vmem:[#allocation5 + $0x18] sm:$0xff]  ;;  %v56_v9 = vld [vmem:[#allocation5 + $0x20] sm:$0xff]  ;;  %v58_v10 = vsub.f32 %v46_v0, %v52_v5  ;;  %v59_v11 = vsub.f32 %v47_v1, %v53_v6  ;;  %v60_v12 = vsub.f32 %v48_v2, %v54_v7  ;;  %v57_v14 = vld [vmem:[#allocation5 + $0x28] sm:$0xff]  ;;  %s157_s8 = scalar_lea.vmem %s96_s6, 16  ;;  %s161_s9 = scalar_lea.vmem %s96_s6, 32 }
  0x2a   :  { %v51_v13 = vld [vmem:[#allocation2 + $0x28] sm:$0xff]  ;;  %v61_v15 = vsub.f32 %v49_v3, %v55_v8  ;;  %v62_v16 = vsub.f32 %v50_v4, %v56_v9  ;;  %p158_p2 = scmp.ne.s32.totalorder %s96_s6, %s157_s8  ;;  %p162_p3 = scmp.lt.s32.totalorder %s96_s6, %s96_s6 }
  0x2b   :  { %v64_v17 = vand.u32 2147483647, %v58_v10  ;;  %v65_v18 = vand.u32 2147483647, %v59_v11  ;;  %v66_v19 = vand.u32 2147483647, %v60_v12  ;;  %v63_v20 = vsub.f32 %v51_v13, %v57_v14  ;;  %p163_p4 = scmp.lt.s32.totalorder %s161_s9, %s157_s8 }
  0x2c   :  { %v67_v21 = vand.u32 2147483647, %v61_v15  ;;  %v68_v23 = vand.u32 2147483647, %v62_v16 }
  0x2d   :  { %v70_v22 = vadd.f32 %v65_v18, %v64_v17  ;;  %v69_v25 = vand.u32 2147483647, %v63_v20  ;;  %p164_p5 = por %p163_p4, %p162_p3 }
  0x2e   :  { %v84_v37 = vld [vmem:[#allocation7] sm:$0x1] }
  0x2f   :  { %v71_v24 = vadd.f32 %v70_v22, %v66_v19  ;;  %p165_p6 = pnand %p164_p5, %p158_p2 }
  0x31   :  { %v72_v26 = vadd.f32 %v71_v24, %v67_v21 }
  0x33   :  { %v73_v27 = vadd.f32 %v72_v26, %v68_v23 }
  0x35   :  { %v74_v28 = vadd.f32 %v73_v27, %v69_v25 }
  0x37   :  { %75 = vadd.xlane.f32.xlu0 %v74_v28 }
  0xc4   :  { %v76_v30 = vpop.xlane.xlu0 %75 }
  0xc5   :  { %v77_v31 = vrot.slane %v76_v30, 4 }
  0xc7   :  { %v78_v32 = vadd.f32 %v77_v31, %v76_v30 }
  0xc9   :  { %v79_v33 = vrot.slane %v78_v32, 2 }
  0xcb   :  { %v80_v34 = vadd.f32 %v79_v33, %v78_v32 }
  0xcd   :  { %v81_v35 = vrot.slane %v80_v34, 1 }
  0xcf   :  { %v82_v36 = vadd.f32 %v81_v35, %v80_v34 }
  0xd1   :  { %105 = vpush %v82_v36 }
 0x102   :  { %s106_s7 = spop %105 }
 0x103   :  { %v85_v38 = vstv %s106_s7 }
 0x104   :  { %v86_v39 = vadd.f32 %v85_v38, %v84_v37 }
 0x106   :  { %88 = vst.msk [vmem:[#allocation7] sm:$0x1] %vm44_vm0, %v86_v39 }
 0x107   :  { %168 = shalt.err (!%p165_p6)
}
 0x108   :  { %s169_s12 = scalar_lea.hbm %s246_s2, 16 }
 0x109   :  { %p170_p7 = scmp.ne.s32.totalorder %s246_s2, %s169_s12  ;;  %p173_p8 = scmp.lt.u32.totalorder %s169_s12, %s246_s2 }
 0x10b   :  { %p175_p9 = pnand %p173_p8, %p170_p7 }
 0x10d   :  { %178 = shalt.err (!%p175_p9)
}
 0x10e   :  { %98 = dma.vmem_to_hbm [thread:$0]  %s96_s6, 16, %s246_s2, [#allocation4]  }
 0x10f   :  { %183 = dma.done.wait [#allocation4], 16  }
 0x110   :  { %184 = vsyncadd [#allocation4], 4294967280 }
 0x111   :  { %102 = vsyncpa [#allocation3], 1 }
 0x112   :  { %103 = vsyncpa [#allocation6], 1 }
 0x113   :  { %104 = vsyncpa [#allocation4], 1 }

</bundles_post_ra>
